<compile_context>
chip_gen: v5e
topology: v5e:2x2
jax: 0.10.0
libtpu: 0.0.40
codegen_flags: <defaults>
</compile_context>

<pallas_src>
import math

import jax
import jax.numpy as jnp
from jax.experimental import pallas as pl
from jax.experimental.pallas import tpu as pltpu

_VMEM = pltpu.MemorySpace.VMEM
RATIO = 0.8
NUM_LAYERS = 5


def _vspecs(n):
    return [pl.BlockSpec(memory_space=_VMEM) for _ in range(n)]


def _cparams():
    # Raised scoped-VMEM limit: > v5e's 16 MiB default, < v7x's 64 MiB physical.
    return pltpu.CompilerParams(vmem_limit_bytes=48 << 20)


# ----------------------------- Pallas kernels -----------------------------

def _graph_conv(a, x_bf16, wcat_ref, b_ref, hidden):
    """GraphConv(aggr='add') + ReLU with merged [W_rel | W_root] weight.

    h = relu(A @ (X @ W_rel) + X @ W_root + b_rel)   (reassociated, identical)
    """
    xw = jnp.dot(x_bf16, wcat_ref[...], preferred_element_type=jnp.float32)   # (N, 2H) f32
    h = (jnp.dot(a, xw[:, :hidden].astype(jnp.bfloat16),
                 preferred_element_type=jnp.float32)
         + xw[:, hidden:] + b_ref[...])
    return jnp.maximum(h, 0.0)                                                # f32 epilogue


def _make_two_layer_kernel(hidden):
    def kernel(a_ref, x_ref, w1_ref, b1_ref, w2_ref, b2_ref, s_ref, wpool_ref,
               x_out_ref, pooled1_ref, pooled2_ref, score_ref):
        a = a_ref[...]                        # (N, N) bf16
        s = s_ref[...]                        # (G, N) bf16

        # Layer A: conv + relu + global_add_pool readout.
        h1 = _graph_conv(a, x_ref[...], w1_ref, b1_ref, hidden)
        h1b = h1.astype(jnp.bfloat16)
        pooled1_ref[...] = jnp.dot(s, h1b, preferred_element_type=jnp.float32)

        # Layer B: conv + relu + readout, feeding the TopKPooling score.
        h2 = _graph_conv(a, h1b, w2_ref, b2_ref, hidden)
        h2b = h2.astype(jnp.bfloat16)
        x_out_ref[...] = h2b
        pooled2_ref[...] = jnp.dot(s, h2b, preferred_element_type=jnp.float32)

        # TopKPooling score (w_pool pre-L2-normalized in JAX), lane-major (1, N):
        # tanh(h2 @ w_pool) computed as a transposed-RHS matmul -> lane-dense store.
        score_ref[...] = jnp.tanh(jax.lax.dot_general(
            wpool_ref[...], h2b, (((1,), (1,)), ((), ())),
            preferred_element_type=jnp.float32))
    return kernel


def _make_final_kernel(hidden):
    def kernel(a_ref, x_ref, w_ref, b_ref, s_ref, pooled_prev_ref,
               w1a_ref, w1b_ref, b1_ref, w2_ref, b2_ref, o_ref):
        a = a_ref[...]
        h5 = _graph_conv(a, x_ref[...], w_ref, b_ref, hidden)
        pooled5 = jnp.dot(s_ref[...], h5.astype(jnp.bfloat16),
                          preferred_element_type=jnp.float32)                 # (G, H) f32

        # JumpingKnowledge('cat') + lin1, with lin1's weight pre-split so no
        # in-kernel concatenate is needed:
        #   relu([p0..p3 | p4] @ W1 + b1) == relu(p0..p3 @ W1a + p4 @ W1b + b1)
        z = (jnp.dot(pooled_prev_ref[...], w1a_ref[...],
                     preferred_element_type=jnp.float32)
             + jnp.dot(pooled5, w1b_ref[...], preferred_element_type=jnp.float32)
             + b1_ref[...])
        z = jnp.maximum(z, 0.0)
        # TODO(synk): F.dropout(p=0.5) is identity in eval mode; training-mode dropout not implemented.
        logits = jnp.dot(z, w2_ref[...], preferred_element_type=jnp.float32) + b2_ref[...]
        m = jnp.max(logits, axis=-1, keepdims=True)
        zl = logits - m
        lse = jnp.log(jnp.sum(jnp.exp(zl), axis=-1, keepdims=True))
        o_ref[...] = zl - lse                                                 # log_softmax
    return kernel


# ----------------------------- Pallas wrappers -----------------------------

def two_layer_block(a, x, w1, b1, w2, b2, s, wpool, hidden):
    """Two fused GraphConv+ReLU layers, both global_add_pool readouts, TopK score."""
    n = x.shape[0]
    g = s.shape[0]
    return pl.pallas_call(
        _make_two_layer_kernel(hidden),
        out_shape=(jax.ShapeDtypeStruct((n, hidden), jnp.bfloat16),   # conv output (nodes)
                   jax.ShapeDtypeStruct((g, hidden), jnp.float32),    # pooled after layer A
                   jax.ShapeDtypeStruct((g, hidden), jnp.float32),    # pooled after layer B
                   jax.ShapeDtypeStruct((1, n), jnp.float32)),        # TopK score, lane-major
        in_specs=_vspecs(8),
        out_specs=_vspecs(4),
        compiler_params=_cparams(),
    )(a, x, w1, b1, w2, b2, s, wpool)


def final_block(a, x, w, b, s, pooled_prev, w1a, w1b, b1, w2, b2, hidden):
    """Last GraphConv + ReLU + readout + JK-cat + lin1/relu/(dropout)/lin2/log_softmax."""
    g = s.shape[0]
    c = w2.shape[1]
    return pl.pallas_call(
        _make_final_kernel(hidden),
        out_shape=jax.ShapeDtypeStruct((g, c), jnp.float32),
        in_specs=_vspecs(11),
        out_specs=pl.BlockSpec(memory_space=_VMEM),
        compiler_params=_cparams(),
    )(a, x, w, b, s, pooled_prev, w1a, w1b, b1, w2, b2)


# ----------------------------- JAX glue -----------------------------

def topk_pool(x, a, s_onehot, score_row, nodes_per_graph, ratio):
    # Per-graph top-k node selection + gather (sorting/selection: no clean Pallas equivalent).
    # Equivalent to PyG TopKPooling: keep top ceil(ratio*n) nodes per graph, gate kept
    # features by the tanh(normalized) score, restrict adjacency/batch to kept nodes.
    # TODO(synk): for large N, pass `perm` as a scalar-prefetch arg and gather A/X/S rows
    # inside the next block's index_map instead of materializing a[perm][:, perm] in XLA.
    g = s_onehot.shape[0]
    k = math.ceil(ratio * nodes_per_graph)                       # static per-graph k
    score_flat = score_row.reshape(-1)                           # (N,)
    score_g = score_flat.reshape(g, nodes_per_graph)
    _, local_idx = jax.lax.top_k(score_g, k)                     # (G, k)
    perm = (local_idx + (jnp.arange(g) * nodes_per_graph)[:, None]).reshape(-1)
    x_new = (x[perm].astype(jnp.float32) * score_flat[perm][:, None]).astype(jnp.bfloat16)
    a_new = a[perm][:, perm]                                     # == filter_adj on edge_index
    s_new = s_onehot[:, perm]                                    # == batch[perm]
    return x_new, a_new, s_new, k


def net_forward(params, x, a, s_onehot, nodes_per_graph):
    hidden = params['hidden']
    # bf16 MXU-side activations / adjacency (f32 accumulation inside kernels).
    x = x.astype(jnp.bfloat16)
    a = a.astype(jnp.bfloat16)
    s = s_onehot.astype(jnp.bfloat16)
    w, b = params['conv_w'], params['conv_b']

    # Block 1: conv1 + conv2 + TopK score #1 (single pallas_call).
    x, p0, p1, score = two_layer_block(a, x, w[0], b[0], w[1], b[1],
                                       s, params['pools'][0], hidden)
    x, a, s, n_pg = topk_pool(x, a, s, score, nodes_per_graph, RATIO)

    # Block 2: conv3 + conv4 + TopK score #2.
    x, p2, p3, score = two_layer_block(a, x, w[2], b[2], w[3], b[3],
                                       s, params['pools'][1], hidden)
    x, a, s, n_pg = topk_pool(x, a, s, score, n_pg, RATIO)

    pooled_prev = jnp.concatenate([p0, p1, p2, p3], axis=-1)      # (G, 4H) f32, tiny

    # Block 3: conv5 + JumpingKnowledge('cat') + lin1/relu/lin2/log_softmax.
    return final_block(a, x, w[4], b[4], s, pooled_prev,
                       params['lin1_w_prev'], params['lin1_w_last'],
                       params['lin1_b'], params['lin2_w'], params['lin2_b'],
                       hidden)


def init_params(key, num_features, hidden, num_classes, num_layers=NUM_LAYERS):
    def dense(k, fan_in, fan_out):
        bound = 1.0 / math.sqrt(fan_in)
        return jax.random.uniform(k, (fan_in, fan_out), jnp.float32, -bound, bound)

    def bias(k, fan_in, fan_out):
        bound = 1.0 / math.sqrt(fan_in)
        return jax.random.uniform(k, (1, fan_out), jnp.float32, -bound, bound)

    keys = iter(jax.random.split(key, 64))
    params = {
        'conv1': {'w_rel': dense(next(keys), num_features, hidden),
                  'b_rel': bias(next(keys), num_features, hidden),
                  'w_root': dense(next(keys), num_features, hidden)},
        'convs': [],
        'pools': [],
    }
    for _ in range(num_layers - 1):
        params['convs'].append({'w_rel': dense(next(keys), hidden, hidden),
                                'b_rel': bias(next(keys), hidden, hidden),
                                'w_root': dense(next(keys), hidden, hidden)})
    for _ in range(num_layers // 2):
        params['pools'].append(dense(next(keys), hidden, 1).T)    # TopKPooling weight (1, hidden)
    params['lin1_w'] = dense(next(keys), num_layers * hidden, hidden)
    params['lin1_b'] = bias(next(keys), num_layers * hidden, hidden)
    params['lin2_w'] = dense(next(keys), hidden, num_classes)
    params['lin2_b'] = bias(next(keys), hidden, num_classes)
    return params


def prepare_params(params):
    """One-time repack: merge W_rel|W_root into one bf16 weight per conv,
    L2-normalize TopKPooling weights, split lin1's weight along the JK-cat axis."""
    def cat_w(c):
        return jnp.concatenate([c['w_rel'], c['w_root']], axis=1).astype(jnp.bfloat16)

    hidden = params['conv1']['w_rel'].shape[1]
    conv_w = [cat_w(params['conv1'])] + [cat_w(c) for c in params['convs']]
    conv_b = [params['conv1']['b_rel']] + [c['b_rel'] for c in params['convs']]
    pools = [(w / jnp.sqrt(jnp.sum(w * w))).astype(jnp.bfloat16)   # (1, H), unit L2 norm
             for w in params['pools']]
    return {
        'hidden': hidden,
        'conv_w': conv_w, 'conv_b': conv_b, 'pools': pools,
        'lin1_w_prev': params['lin1_w'][:4 * hidden],              # (4H, H) f32
        'lin1_w_last': params['lin1_w'][4 * hidden:],              # (H, H)  f32
        'lin1_b': params['lin1_b'],
        'lin2_w': params['lin2_w'], 'lin2_b': params['lin2_b'],
    }


if __name__ == "__main__":
    NUM_FEATURES = 4      # dataset.num_features
    HIDDEN = 32           # args.hidden
    NUM_CLASSES = 3       # dataset.num_classes
    G = 2                 # number of graphs in the batch
    NODES_PER_GRAPH = 10
    EDGES_PER_GRAPH = 30
    N = G * NODES_PER_GRAPH

    key = jax.random.PRNGKey(0)
    k_param, k_x, k_src, k_dst = jax.random.split(key, 4)

    params = prepare_params(init_params(k_param, NUM_FEATURES, HIDDEN, NUM_CLASSES))

    # Node features.
    x = jax.random.normal(k_x, (N, NUM_FEATURES), jnp.float32)

    # Random intra-graph edges -> dense adjacency A[dst, src] += 1.
    src_local = jax.random.randint(k_src, (G, EDGES_PER_GRAPH), 0, NODES_PER_GRAPH)
    dst_local = jax.random.randint(k_dst, (G, EDGES_PER_GRAPH), 0, NODES_PER_GRAPH)
    offsets = (jnp.arange(G) * NODES_PER_GRAPH)[:, None]
    src = (src_local + offsets).reshape(-1)
    dst = (dst_local + offsets).reshape(-1)
    a = jnp.zeros((N, N), jnp.float32).at[dst, src].add(1.0)

    # Batch assignment -> one-hot (G, N).
    batch = jnp.repeat(jnp.arange(G), NODES_PER_GRAPH)
    s_onehot = (batch[None, :] == jnp.arange(G)[:, None]).astype(jnp.float32)

    out = net_forward(params, x, a, s_onehot, NODES_PER_GRAPH)
    out = jax.block_until_ready(out)
    assert out.shape == (G, NUM_CLASSES)
    print("KERNEL_OK")
</pallas_src>

<mosaic_0001>
module attributes {stable_mosaic.version = 11 : i64} {
  func.func @kernel(%arg0: memref<20x20xbf16, #tpu.memory_space<vmem>>, %arg1: memref<20x4xbf16, #tpu.memory_space<vmem>>, %arg2: memref<4x64xbf16, #tpu.memory_space<vmem>>, %arg3: memref<1x32xf32, #tpu.memory_space<vmem>>, %arg4: memref<32x64xbf16, #tpu.memory_space<vmem>>, %arg5: memref<1x32xf32, #tpu.memory_space<vmem>>, %arg6: memref<2x20xbf16, #tpu.memory_space<vmem>>, %arg7: memref<1x32xbf16, #tpu.memory_space<vmem>>, %arg8: memref<20x32xbf16, #tpu.memory_space<vmem>>, %arg9: memref<2x32xf32, #tpu.memory_space<vmem>>, %arg10: memref<2x32xf32, #tpu.memory_space<vmem>>, %arg11: memref<1x20xf32, #tpu.memory_space<vmem>>) attributes {dimension_semantics = [], scalar_prefetch = 0 : i64, scratch_operands = 0 : i64, tpu.core_type = #tpu.core_type<tc>} {
    %c0 = arith.constant 0 : index
    %c0_0 = arith.constant 0 : index
    %0 = vector.load %arg0[%c0, %c0_0] : memref<20x20xbf16, #tpu.memory_space<vmem>>, vector<20x20xbf16>
    %c0_1 = arith.constant 0 : index
    %c0_2 = arith.constant 0 : index
    %1 = vector.load %arg6[%c0_1, %c0_2] : memref<2x20xbf16, #tpu.memory_space<vmem>>, vector<2x20xbf16>
    %c0_3 = arith.constant 0 : index
    %c0_4 = arith.constant 0 : index
    %2 = vector.load %arg1[%c0_3, %c0_4] : memref<20x4xbf16, #tpu.memory_space<vmem>>, vector<20x4xbf16>
    %c0_5 = arith.constant 0 : index
    %c0_6 = arith.constant 0 : index
    %3 = vector.load %arg2[%c0_5, %c0_6] : memref<4x64xbf16, #tpu.memory_space<vmem>>, vector<4x64xbf16>
    %cst = arith.constant dense<0.000000e+00> : vector<20x64xf32>
    %4 = tpu.matmul %2, %3, %cst {dimension_numbers = #tpu.dot_dimension_numbers<[1], [0], [0], [1], [0, 0, 1, 1], [], []>} : vector<20x4xbf16>, vector<4x64xbf16>, vector<20x64xf32> -> vector<20x64xf32>
    %5 = vector.extract_strided_slice %4 {offsets = [0, 0], sizes = [20, 32], strides = [1, 1]} : vector<20x64xf32> to vector<20x32xf32>
    %6 = arith.truncf %5 : vector<20x32xf32> to vector<20x32xbf16>
    %cst_7 = arith.constant dense<0.000000e+00> : vector<20x32xf32>
    %7 = tpu.matmul %0, %6, %cst_7 {dimension_numbers = #tpu.dot_dimension_numbers<[1], [0], [0], [1], [0, 0, 1, 1], [], []>} : vector<20x20xbf16>, vector<20x32xbf16>, vector<20x32xf32> -> vector<20x32xf32>
    %8 = vector.extract_strided_slice %4 {offsets = [0, 32], sizes = [20, 32], strides = [1, 1]} : vector<20x64xf32> to vector<20x32xf32>
    %9 = arith.addf %7, %8 : vector<20x32xf32>
    %c0_8 = arith.constant 0 : index
    %c0_9 = arith.constant 0 : index
    %10 = vector.load %arg3[%c0_8, %c0_9] : memref<1x32xf32, #tpu.memory_space<vmem>>, vector<1x32xf32>
    %11 = vector.broadcast %10 : vector<1x32xf32> to vector<20x32xf32>
    %12 = arith.addf %9, %11 : vector<20x32xf32>
    %cst_10 = arith.constant 0.000000e+00 : f32
    %13 = vector.broadcast %cst_10 : f32 to vector<20x32xf32>
    %14 = arith.maximumf %12, %13 : vector<20x32xf32>
    %15 = arith.truncf %14 : vector<20x32xf32> to vector<20x32xbf16>
    %cst_11 = arith.constant dense<0.000000e+00> : vector<2x32xf32>
    %16 = tpu.matmul %1, %15, %cst_11 {dimension_numbers = #tpu.dot_dimension_numbers<[1], [0], [0], [1], [0, 0, 1, 1], [], []>} : vector<2x20xbf16>, vector<20x32xbf16>, vector<2x32xf32> -> vector<2x32xf32>
    %c0_12 = arith.constant 0 : index
    %c0_13 = arith.constant 0 : index
    %17 = vector.load %arg9[%c0_12, %c0_13] : memref<2x32xf32, #tpu.memory_space<vmem>>, vector<2x32xf32>
    tpu.vector_store %arg9[%c0_12, %c0_13], %16 {strides = array<i32>} : memref<2x32xf32, #tpu.memory_space<vmem>>, vector<2x32xf32>,
    %c0_14 = arith.constant 0 : index
    %c0_15 = arith.constant 0 : index
    %18 = vector.load %arg4[%c0_14, %c0_15] : memref<32x64xbf16, #tpu.memory_space<vmem>>, vector<32x64xbf16>
    %cst_16 = arith.constant dense<0.000000e+00> : vector<20x64xf32>
    %19 = tpu.matmul %15, %18, %cst_16 {dimension_numbers = #tpu.dot_dimension_numbers<[1], [0], [0], [1], [0, 0, 1, 1], [], []>} : vector<20x32xbf16>, vector<32x64xbf16>, vector<20x64xf32> -> vector<20x64xf32>
    %20 = vector.extract_strided_slice %19 {offsets = [0, 0], sizes = [20, 32], strides = [1, 1]} : vector<20x64xf32> to vector<20x32xf32>
    %21 = arith.truncf %20 : vector<20x32xf32> to vector<20x32xbf16>
    %cst_17 = arith.constant dense<0.000000e+00> : vector<20x32xf32>
    %22 = tpu.matmul %0, %21, %cst_17 {dimension_numbers = #tpu.dot_dimension_numbers<[1], [0], [0], [1], [0, 0, 1, 1], [], []>} : vector<20x20xbf16>, vector<20x32xbf16>, vector<20x32xf32> -> vector<20x32xf32>
    %23 = vector.extract_strided_slice %19 {offsets = [0, 32], sizes = [20, 32], strides = [1, 1]} : vector<20x64xf32> to vector<20x32xf32>
    %24 = arith.addf %22, %23 : vector<20x32xf32>
    %c0_18 = arith.constant 0 : index
    %c0_19 = arith.constant 0 : index
    %25 = vector.load %arg5[%c0_18, %c0_19] : memref<1x32xf32, #tpu.memory_space<vmem>>, vector<1x32xf32>
    %26 = vector.broadcast %25 : vector<1x32xf32> to vector<20x32xf32>
    %27 = arith.addf %24, %26 : vector<20x32xf32>
    %cst_20 = arith.constant 0.000000e+00 : f32
    %28 = vector.broadcast %cst_20 : f32 to vector<20x32xf32>
    %29 = arith.maximumf %27, %28 : vector<20x32xf32>
    %30 = arith.truncf %29 : vector<20x32xf32> to vector<20x32xbf16>
    %c0_21 = arith.constant 0 : index
    %c0_22 = arith.constant 0 : index
    %31 = vector.load %arg8[%c0_21, %c0_22] : memref<20x32xbf16, #tpu.memory_space<vmem>>, vector<20x32xbf16>
    tpu.vector_store %arg8[%c0_21, %c0_22], %30 {strides = array<i32>} : memref<20x32xbf16, #tpu.memory_space<vmem>>, vector<20x32xbf16>,
    %cst_23 = arith.constant dense<0.000000e+00> : vector<2x32xf32>
    %32 = tpu.matmul %1, %30, %cst_23 {dimension_numbers = #tpu.dot_dimension_numbers<[1], [0], [0], [1], [0, 0, 1, 1], [], []>} : vector<2x20xbf16>, vector<20x32xbf16>, vector<2x32xf32> -> vector<2x32xf32>
    %c0_24 = arith.constant 0 : index
    %c0_25 = arith.constant 0 : index
    %33 = vector.load %arg10[%c0_24, %c0_25] : memref<2x32xf32, #tpu.memory_space<vmem>>, vector<2x32xf32>
    tpu.vector_store %arg10[%c0_24, %c0_25], %32 {strides = array<i32>} : memref<2x32xf32, #tpu.memory_space<vmem>>, vector<2x32xf32>,
    %c0_26 = arith.constant 0 : index
    %c0_27 = arith.constant 0 : index
    %34 = vector.load %arg7[%c0_26, %c0_27] : memref<1x32xbf16, #tpu.memory_space<vmem>>, vector<1x32xbf16>
    %cst_28 = arith.constant dense<0.000000e+00> : vector<1x20xf32>
    %35 = tpu.matmul %34, %30, %cst_28 {dimension_numbers = #tpu.dot_dimension_numbers<[1], [1], [0], [0], [0, 0, 1, 0], [], []>} : vector<1x32xbf16>, vector<20x32xbf16>, vector<1x20xf32> -> vector<1x20xf32>
    %36 = math.tanh %35 : vector<1x20xf32>
    %c0_29 = arith.constant 0 : index
    %c0_30 = arith.constant 0 : index
    %37 = vector.load %arg11[%c0_29, %c0_30] : memref<1x20xf32, #tpu.memory_space<vmem>>, vector<1x20xf32>
    tpu.vector_store %arg11[%c0_29, %c0_30], %36 {strides = array<i32>} : memref<1x20xf32, #tpu.memory_space<vmem>>, vector<1x20xf32>,
    return
  }
}

</mosaic_0001>

<bundles_post_ra>
// kernel: tpu_custom_call.1
= control target key start
LH: loop header
LB: loop body
LE: loop exit
PB: predicated region body
PF: predicated region fallthrough
CT: control target
= control target key end

     0   :  { %17 = vsyncpa [#allocation3], 0  ;;  %s745_s0 = inlined_call_operand.hbm [shape: bf16[20,20], index: 0, kind: input, shape index: {}]   ;;  %s746_s1 = inlined_call_operand.vmem [shape: bf16[20,4], index: 1, kind: input, shape index: {}]   ;;  %s747_s2 = inlined_call_operand.hbm [shape: bf16[4,64], index: 2, kind: input, shape index: {}]   ;;  %s748_s3 = inlined_call_operand.vmem [shape: f32[1,32], index: 3, kind: input, shape index: {}]   ;;  %s749_s4 = inlined_call_operand.vmem [shape: bf16[32,64], index: 4, kind: input, shape index: {}]   ;;  %s750_s5 = inlined_call_operand.vmem [shape: f32[1,32], index: 5, kind: input, shape index: {}]   ;;  %s751_s6 = inlined_call_operand.vmem [shape: bf16[2,20], index: 6, kind: input, shape index: {}]   ;;  %s752_s7 = inlined_call_operand.vmem [shape: bf16[1,32], index: 7, kind: input, shape index: {}]   ;;  %s753_s8 = inlined_call_operand.hbm [shape: bf16[20,32], index: 8, kind: output, shape index: {0}]   ;;  %s754_s9 = inlined_call_operand.hbm [shape: f32[2,32], index: 9, kind: output, shape index: {1}]   ;;  %s755_s10 = inlined_call_operand.hbm [shape: f32[2,32], index: 10, kind: output, shape index: {2}]   ;;  %s756_s11 = inlined_call_operand.hbm [shape: f32[1,20], index: 11, kind: output, shape index: {3}]  }
   0x1   :  { %18 = vsyncpa [#allocation6], 0 }
   0x2   :  { %19 = vsyncpa [#allocation4], 0 }
   0x3   :  { %20 = vsyncpa [#allocation9], 0 }
   0x4   :  { %21 = vsyncpa [#allocation12], 0  ;;  %s26_s19 = sshll.u32 %s745_s0, 4  ;;  %s603_s20 = smov [#allocation2]   ;;  %s27_s19 = int_to_ptr.hbm [resolvable:$true] %s26_s19 }
   0x5   :  { %s28_s21 = sshll.u32 %s603_s20, 4  ;;  %s42_s24 = sshll.u32 %s747_s2, 4  ;;  %s29_s21 = int_to_ptr.vmem [resolvable:$true] %s28_s21  ;;  %s43_s24 = int_to_ptr.hbm [resolvable:$true] %s42_s24 }
   0x6   :  { %s604_s25 = smov 64   ;;  %s605_s26 = smov 4  }
   0x7   :  { %34 = dma.hbm_to_vmem [thread:$0]  %s27_s19, 192, %s29_s21, [#allocation3], %s604_s25, %s604_s25, %s605_s26  }
   0x8   :  { %s606_s27 = smov [#allocation5]  }
   0x9   :  { %s44_s28 = sshll.u32 %s606_s27, 4  ;;  %s45_s28 = int_to_ptr.vmem [resolvable:$true] %s44_s28 }
   0xa   :  { %47 = dma.hbm_to_vmem [thread:$0]  %s43_s24, 32, %s45_s28, [#allocation6]  }
   0xb   :  { %593 = dma.done.wait [#allocation3], 192  }
   0xc   :  { %594 = vsyncadd [#allocation3], 4294967104 }
   0xd   :  { %595 = dma.done.wait [#allocation6], 32  }
   0xe   :  { %596 = vsyncadd [#allocation6], 4294967264  ;;  %vm90_vm0 = vcmask 1041408   ;;  %v74_v0 = vld [vmem:[#allocation5] sm:$0x3]  ;;  %v433_v2 = vld [vmem:[%s746_s1] sm:$0xff] }
   0xf   :  { %v92_v1 = vsel %vm90_vm0, %v74_v0, 0  ;;  %vm83_vm1 = vcmask 31744   ;;  %v73_v3 = vld [vmem:[%s746_s1 + $0x8] sm:$0x3]  ;;  %s607_s12 = smov 96   ;;  %v432_v12 = vld [vmem:[#allocation2] sm:$0xff] }
  0x10   :  { %101 = vmatpush.bf16.msra.mxu0 %v92_v1  ;;  %v80_v4 = vunpack.c.l.b16 %v73_v3  ;;  %vm134_vm2 = vcmask 162816   ;;  %v69_v14 = vld [vmem:[#allocation2 + $0x8] sm:$0x3]  ;;  %v434_v18 = vld [vmem:[%s749_s4] sm:$0xff]  ;;  %vm211_vm3 = vcmask 261120   ;;  %vm193_vm4 = vcmask 254976  }
  0x11   :  { %v119_v15 = vunpack.c.l.b16 %v69_v14  ;;  %v435_v17 = vld [vmem:[%s749_s4 + $0x8] sm:$0xff]  ;;  %v445_v22 = vld [vmem:[%s748_s3] ss:$0 sm:$0xff]  ;;  %vm283_vm5 = vcmask 257024   ;;  %s608_s20 = smov [#allocation8]   ;;  %s358_s24 = sshll.u32 %s754_s9, 4  ;;  %s359_s24 = int_to_ptr.hbm [resolvable:$true] %s358_s24 }
  0x12   :  { %v82_v5 = vpack.c.b16 %v80_v4, %v80_v4  ;;  %223 = vmatpush.bf16.msra.mxu3 %v435_v17  ;;  %v70_v39 = vld [vmem:[%s751_s6] sm:$0x1]  ;;  %s356_s21 = sshll.u32 %s608_s20, 4  ;;  %s344_s0 = sshll.u32 %s753_s8, 4  ;;  %vm336_vm6 = vcmask 155648   ;;  %s357_s21 = int_to_ptr.vmem [resolvable:$true] %s356_s21  ;;  %s345_s0 = int_to_ptr.hbm [resolvable:$true] %s344_s0 }
  0x13   :  { %409 = vmatmul.msk.bf16.vlgmr.msra.gmra.mxu0 %vm83_vm1, %v433_v2  ;;  %v121_v16 = vpack.c.b16 %v119_v15, %v119_v15  ;;  %v446_v50 = vld [vmem:[%s750_s5] ss:$0 sm:$0xff]  ;;  %s609_s2 = smov [#allocation7]   ;;  %s369_s9 = sshll.u32 %s755_s10, 4  ;;  %s370_s9 = int_to_ptr.hbm [resolvable:$true] %s369_s9 }
  0x14   :  { %s342_s29 = sshll.u32 %s609_s2, 4  ;;  %s611_s8 = smov [#allocation11]   ;;  %s343_s29 = int_to_ptr.vmem [resolvable:$true] %s342_s29 }
  0x15   :  { %s378_s13 = sshll.u32 %s611_s8, 4  ;;  %s379_s13 = int_to_ptr.vmem [resolvable:$true] %s378_s13 }
  0x16   :  { %224 = vmatpush.bf16.msra.mxu3 %v434_v18 }
  0x23   :  { %410 = vmatmul.msk.bf16.gmra.mxu0 %vm83_vm1, %v82_v5 }
  0x90   :  { %v103_v6 = vpop.f32.mrf.mxu0 }
  0x91   :  { %125 = vrot.lane.b32.xlu0 %v103_v6, %s607_s12 }
  0x98   :  { %v105_v7 = vpop.f32.mrf.mxu0 }
  0x99   :  { %127 = vrot.lane.b32.xlu0 %v105_v7, %s607_s12  ;;  %v112_v11 = vpack.c.bf16 %v105_v7, %v103_v6 }
  0xa0   :  { %v108_v8 = vpop.f32.mrf.mxu0 }
  0xa1   :  { %129 = vrot.lane.b32.xlu1 %v108_v8, %s607_s12  ;;  %v113_v9 = vpack.c.bf16 %v108_v8, %v108_v8 }
  0xa3   :  { %v142_v10 = vsel %vm90_vm0, %v113_v9, 0 }
  0xa4   :  { %150 = vmatpush.bf16.msra.mxu1 %v142_v10 }
  0xa8   :  { %v110_v13 = vpop.f32.mrf.mxu0  ;;  %151 = vmatpush.bf16.msra.mxu1 %v112_v11 }
  0xa9   :  { %v313_v13 = vld [vmem:[%s752_s7] sm:$0x1]  ;;  %s610_s7 = smov [#allocation10]  }
  0xaa   :  { %s367_s30 = sshll.u32 %s610_s7, 4  ;;  %s368_s30 = int_to_ptr.vmem [resolvable:$true] %s367_s30 }
  0xab   :  { %415 = vmatmul.msk.bf16.vlgmr.msra.gmra.mxu1 %vm134_vm2, %v432_v12 }
  0xbb   :  { %416 = vmatmul.msk.bf16.gmra.mxu1 %vm134_vm2, %v121_v16 }
 0x103   :  { %v126_v19 = vpop.permute.xlu0 %125 }
 0x10b   :  { %v128_v23 = vpop.permute.xlu0 %127 }
 0x113   :  { %v130_v31 = vpop.permute.xlu1 %129 }
 0x128   :  { %v153_v20 = vpop.f32.mrf.mxu1 }
 0x129   :  { %v154_v21 = vadd.f32 %v153_v20, %v126_v19 }
 0x12b   :  { %v166_v25 = vadd.f32 %v445_v22, %v154_v21 }
 0x12d   :  { %v169_v28 = vmax.f32 %v166_v25, 0.0 }
 0x130   :  { %v155_v24 = vpop.f32.mrf.mxu1 }
 0x131   :  { %v156_v26 = vadd.f32 %v155_v24, %v128_v23 }
 0x133   :  { %v167_v27 = vadd.f32 %v445_v22, %v156_v26 }
 0x135   :  { %v170_v29 = vmax.f32 %v167_v27, 0.0 }
 0x137   :  { %v172_v30 = vpack.c.bf16 %v170_v29, %v169_v28 }
 0x138   :  { %v158_v32 = vpop.f32.mrf.mxu1 }
 0x139   :  { %v159_v33 = vadd.f32 %v158_v32, %v130_v31  ;;  %426 = vmatmul.msk.bf16.vlgmr.msra.gmra.mxu3 %vm211_vm3, %v172_v30 }
 0x13b   :  { %v168_v34 = vadd.f32 %v445_v22, %v159_v33 }
 0x13d   :  { %v171_v35 = vmax.f32 %v168_v34, 0.0 }
 0x13f   :  { %v173_v36 = vpack.c.bf16 %v171_v35, %v171_v35 }
 0x140   :  { %v160_v37 = vpop.f32.mrf.mxu1 }
 0x141   :  { %v178_v38 = vsel %vm90_vm0, %v173_v36, 0 }
 0x142   :  { %186 = vmatpush.bf16.msra.mxu2 %v178_v38 }
 0x146   :  { %187 = vmatpush.bf16.msra.mxu2 %v172_v30 }
 0x149   :  { %427 = vmatmul.msk.bf16.gmra.mxu3 %vm211_vm3, %v173_v36  ;;  %417 = vmatmul.msk.bf16.vlgmr.msra.gmra.mxu2 %vm134_vm2, %v70_v39 }
 0x1bc   :  { %v226_v40 = vpop.f32.mrf.mxu3 }
 0x1bd   :  { %240 = vrot.lane.b32.xlu2 %v226_v40, %s607_s12 }
 0x1c4   :  { %v228_v41 = vpop.f32.mrf.mxu3 }
 0x1c5   :  { %242 = vrot.lane.b32.xlu2 %v228_v41, %s607_s12  ;;  %v235_v45 = vpack.c.bf16 %v228_v41, %v226_v40 }
 0x1cc   :  { %v231_v42 = vpop.f32.mrf.mxu3  ;;  %v189_v47 = vpop.f32.mrf.mxu2 }
 0x1cd   :  { %v236_v43 = vpack.c.bf16 %v231_v42, %v231_v42  ;;  %244 = vrot.lane.b32.xlu1 %v231_v42, %s607_s12  ;;  %194 = vst.msk [vmem:[#allocation8] sm:$0x3] %vm193_vm4, %v189_v47 }
 0x1ce   :  { %361 = dma.vmem_to_hbm [thread:$0]  %s357_s21, 32, %s359_s24, [#allocation9]  }
 0x1cf   :  { %v250_v44 = vsel %vm90_vm0, %v236_v43, 0 }
 0x1d0   :  { %258 = vmatpush.bf16.msrb.mxu2 %v250_v44 }
 0x1d4   :  { %v233_v46 = vpop.f32.mrf.mxu3  ;;  %259 = vmatpush.bf16.msrb.mxu2 %v235_v45  ;;  %v191_v48 = vpop.f32.mrf.mxu2 }
 0x1d7   :  { %428 = vmatmul.msk.bf16.vlgmr.msrb.gmra.mxu2 %vm134_vm2, %v432_v12 }
 0x1e7   :  { %429 = vmatmul.msk.bf16.gmra.mxu2 %vm134_vm2, %v121_v16 }
 0x217   :  { %v241_v49 = vpop.permute.xlu2 %240 }
 0x21f   :  { %v243_v56 = vpop.permute.xlu2 %242 }
 0x23f   :  { %v245_v62 = vpop.permute.xlu1 %244 }
 0x25a   :  { %v261_v51 = vpop.f32.mrf.mxu2 }
 0x25b   :  { %v262_v52 = vadd.f32 %v261_v51, %v241_v49 }
 0x25d   :  { %v274_v53 = vadd.f32 %v446_v50, %v262_v52 }
 0x25f   :  { %v277_v54 = vmax.f32 %v274_v53, 0.0 }
 0x261   :  { %v280_v55 = vpack.c.bf16 %v277_v54, %v277_v54 }
 0x262   :  { %v263_v57 = vpop.f32.mrf.mxu2 }
 0x263   :  { %284 = vst.msk [vmem:[#allocation7] sm:$0xf] %vm283_vm5, %v280_v55  ;;  %v264_v58 = vadd.f32 %v263_v57, %v243_v56  ;;  %v290_v10 = vunpack.c.l.b16 %v280_v55 }
 0x265   :  { %v275_v59 = vadd.f32 %v446_v50, %v264_v58 }
 0x267   :  { %v278_v60 = vmax.f32 %v275_v59, 0.0 }
 0x269   :  { %v281_v61 = vpack.c.bf16 %v278_v60, %v278_v60 }
 0x26a   :  { %v266_v63 = vpop.f32.mrf.mxu2 }
 0x26b   :  { %285 = vst.msk [vmem:[#allocation7 + $0x4] sm:$0xf] %vm283_vm5, %v281_v61  ;;  %v267_v0 = vadd.f32 %v266_v63, %v245_v62  ;;  %v291_v7 = vunpack.c.l.b16 %v281_v61 }
 0x26d   :  { %v276_v1 = vadd.f32 %v446_v50, %v267_v0  ;;  %v293_v11 = vpack.c.b16 %v291_v7, %v290_v10 }
 0x26f   :  { %v279_v2 = vmax.f32 %v276_v1, 0.0  ;;  %v318_v12 = vsel %vm211_vm3, %v293_v11, 0 }
 0x271   :  { %v282_v3 = vpack.c.bf16 %v279_v2, %v279_v2 }
 0x272   :  { %v268_v4 = vpop.f32.mrf.mxu2 }
 0x273   :  { %286 = vst.msk [vmem:[#allocation7 + $0x8] sm:$0x3] %vm193_vm4, %v282_v3  ;;  %v292_v5 = vunpack.c.l.b16 %v282_v3 }
 0x274   :  { %350 = dma.vmem_to_hbm [thread:$0]  %s343_s29, 192, %s345_s0, [#allocation4], %s604_s25, %s604_s25, %s605_s26  }
 0x275   :  { %v294_v6 = vpack.c.b16 %v292_v5, %v292_v5  ;;  %s380_s25 = sshll.u32 %s756_s11, 4  ;;  %s381_s25 = int_to_ptr.hbm [resolvable:$true] %s380_s25 }
 0x277   :  { %v297_v8 = vsel %vm90_vm0, %v294_v6, 0  ;;  %v320_v9 = vsel %vm211_vm3, %v294_v6, 0 }
 0x278   :  { %305 = vmatpush.bf16.msrb.mxu0 %v297_v8  ;;  %328 = vmatpush.bf16.xpose.msrb.mxu1 %v320_v9 }
 0x27c   :  { %306 = vmatpush.bf16.msrb.mxu0 %v293_v11 }
 0x27f   :  { %430 = vmatmul.msk.bf16.vlgmr.msrb.gmra.mxu0 %vm134_vm2, %v70_v39 }
 0x280   :  { %329 = vmatpush.bf16.xpose.msrb.mxu1 %v318_v12 }
 0x287   :  { %431 = vmatmul.msk.bf16.vlgmr.msrb.gmra.mxu1 %vm211_vm3, %v313_v13 }
 0x2fc   :  { %v308_v14 = vpop.f32.mrf.mxu0 }
 0x2fd   :  { %312 = vst.msk [vmem:[#allocation10] sm:$0x3] %vm193_vm4, %v308_v14 }
 0x2fe   :  { %372 = dma.vmem_to_hbm [thread:$0]  %s368_s30, 32, %s370_s9, [#allocation9]  }
 0x304   :  { %v331_v15 = vpop.f32.mrf.mxu1  ;;  %v310_v16 = vpop.f32.mrf.mxu0 }
 0x305   :  { %447 = vtanh.f32 %v331_v15 }
 0x30b   :  { %v448_v17 = vpop.eup %447 }
 0x30c   :  { %v333_v18 = vpop.f32.mrf.mxu1  ;;  %337 = vst.msk [vmem:[#allocation11] sm:$0x1] %vm336_vm6, %v448_v17 }
 0x30d   :  { %383 = dma.vmem_to_hbm [thread:$0]  %s379_s13, 16, %s381_s25, [#allocation12]  }
 0x30e   :  { %597 = dma.done.wait [#allocation4], 192  }
 0x30f   :  { %598 = vsyncadd [#allocation4], 4294967104 }
 0x310   :  { %599 = dma.done.wait [#allocation9], 64  }
 0x311   :  { %600 = vsyncadd [#allocation9], 4294967232 }
 0x312   :  { %601 = dma.done.wait [#allocation12], 16  }
 0x313   :  { %602 = vsyncadd [#allocation12], 4294967280 }
 0x314   :  { %400 = vsyncpa [#allocation3], 1 }
 0x315   :  { %401 = vsyncpa [#allocation6], 1 }
 0x316   :  { %402 = vsyncpa [#allocation4], 1 }
 0x317   :  { %403 = vsyncpa [#allocation9], 1 }
 0x318   :  { %404 = vsyncpa [#allocation12], 1 }

</bundles_post_ra>
